<compile_context>
chip_gen: v7x
topology: tpu7x:2x2x1
jax: 0.10.0
libtpu: 0.0.40
codegen_flags: <defaults>
</compile_context>

<pallas_src>
import functools

import jax
import jax.numpy as jnp
from jax.experimental import pallas as pl
from jax.experimental.pallas import tpu as pltpu


def _round_up(v, m):
    return (v + m - 1) // m * m


def _mlp_kernel(x_ref, *refs, n_layers):
    # refs = [w0, b0, w1, b1, ..., w_{L-1}, b_{L-1}, out_ref]
    o_ref = refs[-1]
    h = x_ref[...]                                   # (tb, f_in), K=300 is fine
    for l in range(n_layers):
        w_ref = refs[2 * l]
        b_ref = refs[2 * l + 1]
        h = jnp.dot(h.astype(w_ref.dtype), w_ref[...],
                    preferred_element_type=jnp.float32) + b_ref[...]
        h = jnp.maximum(h, 0.0)                      # nn.ReLU after every Linear
    # Store only the real output lanes (masked store; vst slot is not the
    # bottleneck here and it saves the 128-wide HBM writeback + wrapper slice).
    o_ref[...] = h[:, :o_ref.shape[1]].astype(o_ref.dtype)


def pack_mlp_params(weights, biases, *, compute_dtype=jnp.float32):
    """One-time packing of nn.Linear params (hoisted out of the forward path).

    weights[l]: (out_l, in_l) PyTorch layout, biases[l]: (out_l,).
    Hidden/output widths are zero-padded to multiples of 128 (lane dense in
    VMEM); the input width (layer 0 fan-in) is left exact so x needs no pad.
    Returns (packed_list, dims, dims_pad).
    """
    assert len(weights) == len(biases)
    n_layers = len(weights)
    dims = [weights[0].shape[1]] + [w.shape[0] for w in weights]
    dims_pad = [dims[0]] + [_round_up(d, 128) for d in dims[1:]]

    packed = []
    for l, (w, b) in enumerate(zip(weights, biases)):
        w_t = jnp.transpose(w).astype(compute_dtype)            # (in_l, out_l)
        w_p = jnp.zeros((dims_pad[l], dims_pad[l + 1]), compute_dtype)
        w_p = w_p.at[:dims[l], :dims[l + 1]].set(w_t)
        b_p = jnp.zeros((1, dims_pad[l + 1]), jnp.float32)       # bias stays f32
        b_p = b_p.at[0, :dims[l + 1]].set(b.astype(jnp.float32))
        packed += [w_p, b_p]
    return packed, dims, dims_pad


def mlp_forward(x, packed, dims, dims_pad, *, block_b=512):
    """x: (B, dims[0]). Returns (B, dims[-1]) f32, matching module.forward."""
    n_layers = len(dims) - 1
    B, f_in = x.shape
    assert f_in == dims[0]
    out_last = dims[-1]

    # ---- batch tiling: large tiles, >= 2 parallel blocks when possible ----
    b_pad = _round_up(max(B, 8), 8)
    n_blocks = -(-b_pad // min(block_b, b_pad))          # ceil div
    if n_blocks == 1 and b_pad >= 16:
        n_blocks = 2                                     # keep both v7x TCs busy
    tb = _round_up(-(-b_pad // n_blocks), 8)
    b_pad = n_blocks * tb

    if b_pad != B:                                       # tiny row-only pad
        x_in = jnp.zeros((b_pad, f_in), x.dtype).at[:B, :].set(x)
    else:
        x_in = x

    in_specs = [pl.BlockSpec((tb, f_in), lambda i: (i, 0))]
    for l in range(n_layers):
        # Constant block index across the batch grid -> no per-block re-DMA,
        # and no wasted second pipeline buffer for these small operands.
        in_specs.append(pl.BlockSpec((dims_pad[l], dims_pad[l + 1]),
                                     lambda i: (0, 0)))
        in_specs.append(pl.BlockSpec((1, dims_pad[l + 1]), lambda i: (0, 0)))
    out_specs = pl.BlockSpec((tb, out_last), lambda i: (i, 0))

    flops = sum(2 * b_pad * dims_pad[l] * dims_pad[l + 1]
                for l in range(n_layers))
    bytes_accessed = (x_in.dtype.itemsize * b_pad * f_in
                      + 4 * b_pad * out_last
                      + sum(int(p.size) * p.dtype.itemsize for p in packed))

    out = pl.pallas_call(
        functools.partial(_mlp_kernel, n_layers=n_layers),
        out_shape=jax.ShapeDtypeStruct((b_pad, out_last), jnp.float32),
        grid=(n_blocks,),
        in_specs=in_specs,
        out_specs=out_specs,
        compiler_params=pltpu.CompilerParams(
            dimension_semantics=("parallel",)),
        cost_estimate=pl.CostEstimate(flops=flops, transcendentals=0,
                                      bytes_accessed=bytes_accessed),
    )(x_in, *packed)

    return out[:B] if b_pad != B else out


if __name__ == "__main__":
    # Shapes implied by the module defaults:
    #   dataSize=[1, 300], dims['nodes'] = [300, 100, 32, 3]
    #   -> Linear(300,100)+ReLU, Linear(100,32)+ReLU, Linear(32,3)+ReLU
    nodes = [300, 100, 32, 3]
    batch = 2

    key = jax.random.PRNGKey(0)
    ks = jax.random.split(key, 2 * (len(nodes) - 1) + 1)

    weights, biases = [], []
    for l in range(len(nodes) - 1):
        bound = 1.0 / (nodes[l] ** 0.5)                  # nn.Linear init range
        w = jax.random.uniform(ks[2 * l], (nodes[l + 1], nodes[l]),
                               jnp.float32, -bound, bound)
        b = jax.random.uniform(ks[2 * l + 1], (nodes[l + 1],),
                               jnp.float32, -bound, bound)
        weights.append(w)
        biases.append(b)

    x = jax.random.normal(ks[-1], (batch, nodes[0]), jnp.float32)

    # Pack once (hoisted out of the per-forward path); use
    # compute_dtype=jnp.bfloat16 here to halve weight bytes / hit the bf16 MXU
    # path on v5e/v6e (accumulation stays f32).  Default f32 for exactness.
    packed, dims, dims_pad = pack_mlp_params(weights, biases,
                                             compute_dtype=jnp.float32)

    out = mlp_forward(x, packed, dims, dims_pad)
    jax.block_until_ready(out)

    # Pure-JAX reference (same forward semantics as the PyTorch module).
    ref = x
    for w, b in zip(weights, biases):
        ref = jnp.maximum(jnp.dot(ref, w.T,
                                  precision=jax.lax.Precision.HIGHEST) + b, 0.0)

    assert out.shape == (batch, nodes[-1])
    assert jnp.allclose(out, ref, atol=1e-3, rtol=1e-3), \
        float(jnp.max(jnp.abs(out - ref)))
    print("KERNEL_OK")
</pallas_src>

<mosaic_0001>
module attributes {stable_mosaic.version = 11 : i64} {
  func.func @_mlp_kernel(%arg0: i32, %arg1: memref<8x300xf32, #tpu.memory_space<vmem>>, %arg2: memref<300x128xf32, #tpu.memory_space<vmem>>, %arg3: memref<1x128xf32, #tpu.memory_space<vmem>>, %arg4: memref<128x128xf32, #tpu.memory_space<vmem>>, %arg5: memref<1x128xf32, #tpu.memory_space<vmem>>, %arg6: memref<128x128xf32, #tpu.memory_space<vmem>>, %arg7: memref<1x128xf32, #tpu.memory_space<vmem>>, %arg8: memref<8x3xf32, #tpu.memory_space<vmem>>) attributes {dimension_semantics = [#tpu.dimension_semantics<parallel>], iteration_bounds = array<i64: 1>, scalar_prefetch = 0 : i64, scratch_operands = 0 : i64, tpu.core_type = #tpu.core_type<tc>, window_params = [{transform_indices = @transform_0, window_bounds = array<i64: 8, 300>}, {pipeline_mode = #tpu.pipeline_mode<synchronous>, transform_indices = @transform_1, window_bounds = array<i64: 300, 128>}, {pipeline_mode = #tpu.pipeline_mode<synchronous>, transform_indices = @transform_2, window_bounds = array<i64: 1, 128>}, {pipeline_mode = #tpu.pipeline_mode<synchronous>, transform_indices = @transform_3, window_bounds = array<i64: 128, 128>}, {pipeline_mode = #tpu.pipeline_mode<synchronous>, transform_indices = @transform_4, window_bounds = array<i64: 1, 128>}, {pipeline_mode = #tpu.pipeline_mode<synchronous>, transform_indices = @transform_5, window_bounds = array<i64: 128, 128>}, {pipeline_mode = #tpu.pipeline_mode<synchronous>, transform_indices = @transform_6, window_bounds = array<i64: 1, 128>}, {transform_indices = @transform_7, window_bounds = array<i64: 8, 3>}]} {
    %c0 = arith.constant 0 : index
    %c0_0 = arith.constant 0 : index
    %0 = vector.load %arg1[%c0, %c0_0] : memref<8x300xf32, #tpu.memory_space<vmem>>, vector<8x300xf32>
    %c0_1 = arith.constant 0 : index
    %c0_2 = arith.constant 0 : index
    %1 = vector.load %arg2[%c0_1, %c0_2] : memref<300x128xf32, #tpu.memory_space<vmem>>, vector<300x128xf32>
    %cst = arith.constant dense<0.000000e+00> : vector<8x128xf32>
    %2 = tpu.matmul %0, %1, %cst {dimension_numbers = #tpu.dot_dimension_numbers<[1], [0], [0], [1], [0, 0, 1, 1], [], []>} : vector<8x300xf32>, vector<300x128xf32>, vector<8x128xf32> -> vector<8x128xf32>
    %c0_3 = arith.constant 0 : index
    %c0_4 = arith.constant 0 : index
    %3 = vector.load %arg3[%c0_3, %c0_4] : memref<1x128xf32, #tpu.memory_space<vmem>>, vector<1x128xf32>
    %4 = vector.broadcast %3 : vector<1x128xf32> to vector<8x128xf32>
    %5 = arith.addf %2, %4 : vector<8x128xf32>
    %cst_5 = arith.constant 0.000000e+00 : f32
    %6 = vector.broadcast %cst_5 : f32 to vector<8x128xf32>
    %7 = arith.maximumf %5, %6 : vector<8x128xf32>
    %c0_6 = arith.constant 0 : index
    %c0_7 = arith.constant 0 : index
    %8 = vector.load %arg4[%c0_6, %c0_7] : memref<128x128xf32, #tpu.memory_space<vmem>>, vector<128x128xf32>
    %cst_8 = arith.constant dense<0.000000e+00> : vector<8x128xf32>
    %9 = tpu.matmul %7, %8, %cst_8 {dimension_numbers = #tpu.dot_dimension_numbers<[1], [0], [0], [1], [0, 0, 1, 1], [], []>} : vector<8x128xf32>, vector<128x128xf32>, vector<8x128xf32> -> vector<8x128xf32>
    %c0_9 = arith.constant 0 : index
    %c0_10 = arith.constant 0 : index
    %10 = vector.load %arg5[%c0_9, %c0_10] : memref<1x128xf32, #tpu.memory_space<vmem>>, vector<1x128xf32>
    %11 = vector.broadcast %10 : vector<1x128xf32> to vector<8x128xf32>
    %12 = arith.addf %9, %11 : vector<8x128xf32>
    %cst_11 = arith.constant 0.000000e+00 : f32
    %13 = vector.broadcast %cst_11 : f32 to vector<8x128xf32>
    %14 = arith.maximumf %12, %13 : vector<8x128xf32>
    %c0_12 = arith.constant 0 : index
    %c0_13 = arith.constant 0 : index
    %15 = vector.load %arg6[%c0_12, %c0_13] : memref<128x128xf32, #tpu.memory_space<vmem>>, vector<128x128xf32>
    %cst_14 = arith.constant dense<0.000000e+00> : vector<8x128xf32>
    %16 = tpu.matmul %14, %15, %cst_14 {dimension_numbers = #tpu.dot_dimension_numbers<[1], [0], [0], [1], [0, 0, 1, 1], [], []>} : vector<8x128xf32>, vector<128x128xf32>, vector<8x128xf32> -> vector<8x128xf32>
    %c0_15 = arith.constant 0 : index
    %c0_16 = arith.constant 0 : index
    %17 = vector.load %arg7[%c0_15, %c0_16] : memref<1x128xf32, #tpu.memory_space<vmem>>, vector<1x128xf32>
    %18 = vector.broadcast %17 : vector<1x128xf32> to vector<8x128xf32>
    %19 = arith.addf %16, %18 : vector<8x128xf32>
    %cst_17 = arith.constant 0.000000e+00 : f32
    %20 = vector.broadcast %cst_17 : f32 to vector<8x128xf32>
    %21 = arith.maximumf %19, %20 : vector<8x128xf32>
    %22 = vector.extract_strided_slice %21 {offsets = [0, 0], sizes = [8, 3], strides = [1, 1]} : vector<8x128xf32> to vector<8x3xf32>
    %c0_18 = arith.constant 0 : index
    %c0_19 = arith.constant 0 : index
    %23 = vector.load %arg8[%c0_18, %c0_19] : memref<8x3xf32, #tpu.memory_space<vmem>>, vector<8x3xf32>
    tpu.vector_store %arg8[%c0_18, %c0_19], %22 {strides = array<i32>} : memref<8x3xf32, #tpu.memory_space<vmem>>, vector<8x3xf32>,
    return
  }
  func.func @transform_0(%arg0: i32) -> (i32, i32) {
    %c0_i32 = arith.constant 0 : i32
    %c0_i32_0 = arith.constant 0 : i32
    return %arg0, %c0_i32 : i32, i32
  }
  func.func @transform_1(%arg0: i32) -> (i32, i32) {
    %c0_i32 = arith.constant 0 : i32
    %c0_i32_0 = arith.constant 0 : i32
    %c0_i32_1 = arith.constant 0 : i32
    return %c0_i32, %c0_i32_0 : i32, i32
  }
  func.func @transform_2(%arg0: i32) -> (i32, i32) {
    %c0_i32 = arith.constant 0 : i32
    %c0_i32_0 = arith.constant 0 : i32
    %c0_i32_1 = arith.constant 0 : i32
    return %c0_i32, %c0_i32_0 : i32, i32
  }
  func.func @transform_3(%arg0: i32) -> (i32, i32) {
    %c0_i32 = arith.constant 0 : i32
    %c0_i32_0 = arith.constant 0 : i32
    %c0_i32_1 = arith.constant 0 : i32
    return %c0_i32, %c0_i32_0 : i32, i32
  }
  func.func @transform_4(%arg0: i32) -> (i32, i32) {
    %c0_i32 = arith.constant 0 : i32
    %c0_i32_0 = arith.constant 0 : i32
    %c0_i32_1 = arith.constant 0 : i32
    return %c0_i32, %c0_i32_0 : i32, i32
  }
  func.func @transform_5(%arg0: i32) -> (i32, i32) {
    %c0_i32 = arith.constant 0 : i32
    %c0_i32_0 = arith.constant 0 : i32
    %c0_i32_1 = arith.constant 0 : i32
    return %c0_i32, %c0_i32_0 : i32, i32
  }
  func.func @transform_6(%arg0: i32) -> (i32, i32) {
    %c0_i32 = arith.constant 0 : i32
    %c0_i32_0 = arith.constant 0 : i32
    %c0_i32_1 = arith.constant 0 : i32
    return %c0_i32, %c0_i32_0 : i32, i32
  }
  func.func @transform_7(%arg0: i32) -> (i32, i32) {
    %c0_i32 = arith.constant 0 : i32
    %c0_i32_0 = arith.constant 0 : i32
    return %arg0, %c0_i32 : i32, i32
  }
}

</mosaic_0001>

<bundles_post_ra>
// kernel: tpu_custom_call.1
= control target key start
LH: loop header
LB: loop body
LE: loop exit
PB: predicated region body
PF: predicated region fallthrough
CT: control target
= control target key end

     0   :  { %12 = vsyncpa [#allocation3], 0  ;;  %s977_s0 = inlined_call_operand.hbm [shape: f32[8,300], index: 0, kind: input, shape index: {}]   ;;  %s978_s1 = inlined_call_operand.hbm [shape: f32[300,128], index: 1, kind: input, shape index: {}]   ;;  %s979_s2 = inlined_call_operand.vmem [shape: f32[1,128], index: 2, kind: input, shape index: {}]   ;;  %s980_s3 = inlined_call_operand.hbm [shape: f32[128,128], index: 3, kind: input, shape index: {}]   ;;  %s981_s4 = inlined_call_operand.vmem [shape: f32[1,128], index: 4, kind: input, shape index: {}]   ;;  %s982_s5 = inlined_call_operand.hbm [shape: f32[128,128], index: 5, kind: input, shape index: {}]   ;;  %s983_s6 = inlined_call_operand.vmem [shape: f32[1,128], index: 6, kind: input, shape index: {}]   ;;  %s984_s7 = inlined_call_operand.vmem [shape: f32[8,3], index: 7, kind: output, shape index: {}]  }
   0x1   :  { %13 = vsyncpa [#allocation5], 0 }
   0x2   :  { %14 = vsyncpa [#allocation8], 0  ;;  %s833_s24 = smov [#allocation4]   ;;  %s739_s28 = scalar_lea.hbm %s978_s1, 4864 }
   0x3   :  { %s30_s25 = sshll.u32 %s833_s24, 4  ;;  %p740_p0 = scmp.ne.s32.totalorder %s978_s1, %s739_s28  ;;  %s31_s25 = int_to_ptr.vmem [resolvable:$true] %s30_s25 }
   0x4   :  { %p743_p1 = scmp.lt.u32.totalorder %s739_s28, %s978_s1 }
   0x6   :  { %p745_p2 = pnand %p743_p1, %p740_p0 }
   0x8   :  { %748 = shalt.err (!%p745_p2)
}
   0x9   :  { %s749_s10 = scalar_lea.vmem %s31_s25, 4864  ;;  %p754_p4 = scmp.lt.s32.totalorder %s31_s25, %s31_s25 }
   0xa   :  { %p750_p3 = scmp.ne.s32.totalorder %s31_s25, %s749_s10  ;;  %p755_p5 = scmp.lt.s32.totalorder %s749_s10, %s749_s10 }
   0xc   :  { %p756_p6 = por %p755_p5, %p754_p4 }
   0xe   :  { %p757_p7 = pnand %p756_p6, %p750_p3 }
  0x10   :  { %760 = shalt.err (!%p757_p7)
}
  0x11   :  { %s834_s11 = smov 128   ;;  %s835_s12 = smov 8  }
  0x12   :  { %36 = dma.hbm_to_vmem [thread:$0]  %s978_s1, 4864, %s31_s25, [#allocation5], %s834_s11, %s834_s11, %s835_s12  }
  0x13   :  { %s836_s15 = smov [#allocation2]   ;;  %s837_s17 = smov [#allocation6]  }
  0x14   :  { %s21_s16 = sshll.u32 %s836_s15, 4  ;;  %s44_s18 = sshll.u32 %s837_s17, 4  ;;  %s22_s16 = int_to_ptr.vmem [resolvable:$true] %s21_s16  ;;  %s45_s18 = int_to_ptr.vmem [resolvable:$true] %s44_s18 }
  0x15   :  { %s761_s21 = scalar_lea.hbm %s977_s0, 384 }
  0x16   :  { %p762_p8 = scmp.ne.s32.totalorder %s977_s0, %s761_s21  ;;  %p765_p9 = scmp.lt.u32.totalorder %s761_s21, %s977_s0 }
  0x18   :  { %p767_p10 = pnand %p765_p9, %p762_p8 }
  0x1a   :  { %770 = shalt.err (!%p767_p10)
}
  0x1b   :  { %s771_s1 = scalar_lea.vmem %s22_s16, 384  ;;  %p776_p12 = scmp.lt.s32.totalorder %s22_s16, %s22_s16 }
  0x1c   :  { %p772_p11 = scmp.ne.s32.totalorder %s22_s16, %s771_s1  ;;  %p777_p13 = scmp.lt.s32.totalorder %s771_s1, %s771_s1 }
  0x1e   :  { %p778_p0 = por %p777_p13, %p776_p12 }
  0x20   :  { %p779_p1 = pnand %p778_p0, %p772_p11 }
  0x22   :  { %782 = shalt.err (!%p779_p1)
}
  0x23   :  { %24 = dma.hbm_to_vmem [thread:$0]  %s977_s0, 384, %s22_s16, [#allocation3]  }
  0x24   :  { %s783_s30 = scalar_lea.hbm %s980_s3, 2048 }
  0x25   :  { %p784_p2 = scmp.ne.s32.totalorder %s980_s3, %s783_s30  ;;  %p787_p3 = scmp.lt.u32.totalorder %s783_s30, %s980_s3 }
  0x27   :  { %p789_p4 = pnand %p787_p3, %p784_p2 }
  0x29   :  { %792 = shalt.err (!%p789_p4)
}
  0x2a   :  { %s793_s14 = scalar_lea.vmem %s45_s18, 2048  ;;  %p798_p6 = scmp.lt.s32.totalorder %s45_s18, %s45_s18 }
  0x2b   :  { %p794_p5 = scmp.ne.s32.totalorder %s45_s18, %s793_s14  ;;  %p799_p7 = scmp.lt.s32.totalorder %s793_s14, %s793_s14 }
  0x2d   :  { %p800_p8 = por %p799_p7, %p798_p6 }
  0x2f   :  { %p801_p9 = pnand %p800_p8, %p794_p5 }
  0x31   :  { %804 = shalt.err (!%p801_p9)
}
  0x32   :  { %50 = dma.hbm_to_vmem [thread:$0]  %s980_s3, 2048, %s45_s18, [#allocation5], %s834_s11, %s834_s11, %s835_s12  }
  0x33   :  { %s838_s16 = smov [#allocation7]   ;;  %s805_s21 = scalar_lea.hbm %s982_s5, 2048 }
  0x34   :  { %s58_s17 = sshll.u32 %s838_s16, 4  ;;  %p806_p10 = scmp.ne.s32.totalorder %s982_s5, %s805_s21  ;;  %s59_s17 = int_to_ptr.vmem [resolvable:$true] %s58_s17 }
  0x35   :  { %p809_p11 = scmp.lt.u32.totalorder %s805_s21, %s982_s5 }
  0x37   :  { %p811_p12 = pnand %p809_p11, %p806_p10 }
  0x39   :  { %814 = shalt.err (!%p811_p12)
}
  0x3a   :  { %s815_s1 = scalar_lea.vmem %s59_s17, 2048  ;;  %p820_p0 = scmp.lt.s32.totalorder %s59_s17, %s59_s17 }
  0x3b   :  { %p816_p13 = scmp.ne.s32.totalorder %s59_s17, %s815_s1  ;;  %p821_p1 = scmp.lt.s32.totalorder %s815_s1, %s815_s1 }
  0x3d   :  { %p822_p2 = por %p821_p1, %p820_p0 }
  0x3f   :  { %p823_p3 = pnand %p822_p2, %p816_p13 }
  0x41   :  { %826 = shalt.err (!%p823_p3)
}
  0x42   :  { %64 = dma.hbm_to_vmem [thread:$0]  %s982_s5, 2048, %s59_s17, [#allocation8], %s834_s11, %s834_s11, %s835_s12  }
  0x43   :  { %827 = dma.done.wait [#allocation3], 384  }
  0x44   :  { %828 = vsyncadd [#allocation3], 4294966912 }
  0x45   :  { %829 = dma.done.wait [#allocation5], 6912  }
  0x46   :  { %830 = vsyncadd [#allocation5], 4294960384 }
  0x47   :  { %831 = dma.done.wait [#allocation8], 2048  }
  0x48   :  { %832 = vsyncadd [#allocation8], 4294965248  ;;  %v839_v0 = vmov 0.0|0.0   ;;  %vm840_vm0 = vmmov 0   ;;  %v841_v1 = vmov 0.0   ;;  %v98_v2 = vld [vmem:[#allocation4 + $0x80] sm:$0xff] }
  0x49   :  { %671 = vmatprep.subr.bf16.mxu1 %v839_v0  ;;  %566 = vmatprep.mubr.msk.f32.mxu1 %vm840_vm0, %v841_v1  ;;  %v99_v3 = vld [vmem:[#allocation4 + $0x88] sm:$0xff]  ;;  %v82_v4 = vld [vmem:[#allocation4] sm:$0xff]  ;;  %v100_v7 = vld [vmem:[#allocation4 + $0x90] sm:$0xff]  ;;  %vm131_vm1 = vcmask 1043456   ;;  %vm842_vm2 = vmmov 1   ;;  %vm127_vm4 = vcmask 359424  }
  0x4a   :  { %v639_v5 = vpack.c.bf16 %v99_v3, %v98_v2  ;;  %v83_v6 = vld [vmem:[#allocation4 + $0x8] sm:$0xff]  ;;  %v101_v8 = vld [vmem:[#allocation4 + $0x98] sm:$0xff]  ;;  %v84_v11 = vld [vmem:[#allocation4 + $0x10] sm:$0xff]  ;;  %vm464_vm5 = vcmask 23552  }
  0x4b   :  { %v641_v9 = vpack.c.bf16 %v83_v6, %v82_v4  ;;  %v643_v10 = vpack.c.bf16 %v101_v8, %v100_v7  ;;  %v85_v12 = vld [vmem:[#allocation4 + $0x18] sm:$0xff]  ;;  %v102_v13 = vld [vmem:[#allocation4 + $0xa0] sm:$0xff]  ;;  %v103_v14 = vld [vmem:[#allocation4 + $0xa8] sm:$0xff] }
  0x4c   :  { %640 = vmatprep.subr.bf16.mxu0 %v639_v5  ;;  %v645_v15 = vpack.c.bf16 %v85_v12, %v84_v11  ;;  %v647_v16 = vpack.c.bf16 %v103_v14, %v102_v13  ;;  %v86_v17 = vld [vmem:[#allocation4 + $0x20] sm:$0xff]  ;;  %v87_v18 = vld [vmem:[#allocation4 + $0x28] sm:$0xff]  ;;  %v104_v19 = vld [vmem:[#allocation4 + $0xb0] sm:$0xff] }
  0x4d   :  { %642 = vmatpush3.bf16.msra.mxu0 %v641_v9  ;;  %v105_v20 = vld [vmem:[#allocation4 + $0xb8] sm:$0xff]  ;;  %v649_v21 = vpack.c.bf16 %v87_v18, %v86_v17  ;;  %v88_v22 = vld [vmem:[#allocation4 + $0x30] sm:$0xff]  ;;  %v114_v25 = vld [vmem:[#allocation4 + $0x100] sm:$0xff] }
  0x4e   :  { %644 = vmatprep.subr.bf16.mxu0 %v643_v10  ;;  %v651_v23 = vpack.c.bf16 %v105_v20, %v104_v19  ;;  %v89_v24 = vld [vmem:[#allocation4 + $0x38] sm:$0xff]  ;;  %v115_v26 = vld [vmem:[#allocation4 + $0x108] sm:$0xff]  ;;  %v106_v27 = vld [vmem:[#allocation4 + $0xc0] sm:$0xff] }
  0x4f   :  { %v107_v28 = vld [vmem:[#allocation4 + $0xc8] sm:$0xff]  ;;  %v672_v29 = vpack.c.bf16 %v115_v26, %v114_v25  ;;  %v116_v30 = vld [vmem:[#allocation4 + $0x110] sm:$0xff]  ;;  %v117_v31 = vld [vmem:[#allocation4 + $0x118] sm:$0xff]  ;;  %v653_v32 = vpack.c.bf16 %v89_v24, %v88_v22 }
  0x50   :  { %v90_v33 = vld [vmem:[#allocation4 + $0x40] sm:$0xff]  ;;  %v675_v34 = vpack.c.bf16 %v117_v31, %v116_v30  ;;  %v80_v35 = vld [vmem:[#allocation2 + $0x8] sm:$0xff]  ;;  %v655_v36 = vpack.c.bf16 %v107_v28, %v106_v27  ;;  %v91_v37 = vld [vmem:[#allocation4 + $0x48] sm:$0xff] }
  0x51   :  { %646 = vmatpush3.bf16.msra.mxu0 %v645_v15  ;;  %673 = vmatpush3.bf16.msra.mxu1 %v672_v29  ;;  %v118_v38 = vld [vmem:[#allocation4 + $0x120] sm:$0xff]  ;;  %v119_v39 = vld [vmem:[#allocation4 + $0x128] sm:$0xf]  ;;  %v108_v40 = vld [vmem:[#allocation4 + $0xd0] sm:$0xff]  ;;  %v657_v42 = vpack.c.bf16 %v91_v37, %v90_v33 }
  0x52   :  { %648 = vmatprep.subr.bf16.mxu0 %v647_v16  ;;  %674 = vmatprep.subr.bf16.mxu1 %v839_v0  ;;  %v109_v41 = vld [vmem:[#allocation4 + $0xd8] sm:$0xff]  ;;  %v92_v43 = vld [vmem:[#allocation4 + $0x50] sm:$0xff]  ;;  %v678_v44 = vpack.c.bf16 %v119_v39, %v118_v38  ;;  %vm679_vm3 = vmpackc.low %vm131_vm1, %vm842_vm2 }
  0x53   :  { %199 = vmatprep.mubr.f32.mxu0 %v80_v35  ;;  %v659_v45 = vpack.c.bf16 %v109_v41, %v108_v40  ;;  %v93_v46 = vld [vmem:[#allocation4 + $0x58] sm:$0xff]  ;;  %v276_v47 = vld [vmem:[#allocation6] sm:$0xff]  ;;  %v110_v49 = vld [vmem:[#allocation4 + $0xe0] sm:$0xff] }
  0x54   :  { %v277_v48 = vld [vmem:[#allocation6 + $0x8] sm:$0xff]  ;;  %v111_v50 = vld [vmem:[#allocation4 + $0xe8] sm:$0xff]  ;;  %v661_v51 = vpack.c.bf16 %v93_v46, %v92_v43  ;;  %v94_v52 = vld [vmem:[#allocation4 + $0x60] sm:$0xff] }
  0x55   :  { %650 = vmatpush3.bf16.msra.mxu0 %v649_v21  ;;  %676 = vmatpush3.bf16.msra.mxu1 %v675_v34  ;;  %v81_v53 = vld [vmem:[#allocation2 + $0x10] sm:$0xff]  ;;  %v682_v54 = vpack.c.bf16 %v277_v48, %v276_v47  ;;  %v663_v55 = vpack.c.bf16 %v111_v50, %v110_v49  ;;  %v95_v56 = vld [vmem:[#allocation4 + $0x68] sm:$0xff]  ;;  %v278_v57 = vld [vmem:[#allocation6 + $0x10] sm:$0xff] }
  0x56   :  { %652 = vmatprep.subr.bf16.mxu0 %v651_v23  ;;  %677 = vmatprep.subr.bf16.mxu1 %v839_v0  ;;  %v279_v58 = vld [vmem:[#allocation6 + $0x18] sm:$0xff]  ;;  %v112_v59 = vld [vmem:[#allocation4 + $0xf0] sm:$0xff]  ;;  %v113_v60 = vld [vmem:[#allocation4 + $0xf8] sm:$0xff]  ;;  %v665_v61 = vpack.c.bf16 %v95_v56, %v94_v52 }
  0x57   :  { %v96_v62 = vld [vmem:[#allocation4 + $0x70] sm:$0xff]  ;;  %v685_v63 = vpack.c.bf16 %v279_v58, %v278_v57  ;;  %v667_v2 = vpack.c.bf16 %v113_v60, %v112_v59  ;;  %v97_v3 = vld [vmem:[#allocation4 + $0x78] sm:$0xff]  ;;  %v282_v8 = vld [vmem:[#allocation6 + $0x30] sm:$0xff] }
  0x58   :  { %v280_v4 = vld [vmem:[#allocation6 + $0x20] sm:$0xff]  ;;  %v281_v5 = vld [vmem:[#allocation6 + $0x28] sm:$0xff]  ;;  %v669_v6 = vpack.c.bf16 %v97_v3, %v96_v62  ;;  %v283_v9 = vld [vmem:[#allocation6 + $0x38] sm:$0xff] }
  0x59   :  { %654 = vmatpush3.bf16.msra.mxu0 %v653_v32  ;;  %680 = vmatpush3.bf16.msk.msra.mxu1 %vm679_vm3, %v678_v44  ;;  %v688_v7 = vpack.c.bf16 %v281_v5, %v280_v4  ;;  %v79_v10 = vld [vmem:[#allocation2] sm:$0xff]  ;;  %v691_v11 = vpack.c.bf16 %v283_v9, %v282_v8  ;;  %v284_v12 = vld [vmem:[#allocation6 + $0x40] sm:$0xff]  ;;  %v285_v13 = vld [vmem:[#allocation6 + $0x48] sm:$0xff] }
  0x5a   :  { %656 = vmatprep.subr.bf16.mxu0 %v655_v36  ;;  %681 = vmatprep.subr.bf16.mxu1 %v839_v0  ;;  %v694_v14 = vpack.c.bf16 %v285_v13, %v284_v12  ;;  %v286_v15 = vld [vmem:[#allocation6 + $0x50] sm:$0xff]  ;;  %v287_v16 = vld [vmem:[#allocation6 + $0x58] sm:$0xff]  ;;  %v288_v18 = vld [vmem:[#allocation6 + $0x60] sm:$0xff] }
  0x5b   :  { %v697_v17 = vpack.c.bf16 %v287_v16, %v286_v15  ;;  %v289_v19 = vld [vmem:[#allocation6 + $0x68] sm:$0xff]  ;;  %v290_v21 = vld [vmem:[#allocation6 + $0x70] sm:$0xff]  ;;  %v291_v22 = vld [vmem:[#allocation6 + $0x78] sm:$0xff] }
  0x5c   :  { %567 = vmatmul.mubr.msk.f32.vlgmr.msra.gmra.mrb[0].mxu1 %vm127_vm4, %v81_v53  ;;  %v700_v20 = vpack.c.bf16 %v289_v19, %v288_v18  ;;  %v370_v23 = vld [vmem:[#allocation7] sm:$0xff]  ;;  %v371_v24 = vld [vmem:[#allocation7 + $0x8] sm:$0xff]  ;;  %v372_v25 = vld [vmem:[#allocation7 + $0x10] sm:$0xff] }
  0x5d   :  { %658 = vmatpush3.bf16.msra.mxu0 %v657_v42  ;;  %683 = vmatpush3.bf16.msra.mxu1 %v682_v54  ;;  %v706_v26 = vpack.c.bf16 %v371_v24, %v370_v23  ;;  %v373_v27 = vld [vmem:[#allocation7 + $0x18] sm:$0xff]  ;;  %v374_v29 = vld [vmem:[#allocation7 + $0x20] sm:$0xff]  ;;  %v375_v30 = vld [vmem:[#allocation7 + $0x28] sm:$0xff] }
  0x5e   :  { %660 = vmatprep.subr.bf16.mxu0 %v659_v45  ;;  %684 = vmatprep.subr.bf16.mxu1 %v839_v0  ;;  %v709_v28 = vpack.c.bf16 %v373_v27, %v372_v25  ;;  %v712_v31 = vpack.c.bf16 %v375_v30, %v374_v29  ;;  %v376_v32 = vld [vmem:[#allocation7 + $0x30] sm:$0xff]  ;;  %v377_v33 = vld [vmem:[#allocation7 + $0x38] sm:$0xff]  ;;  %v378_v35 = vld [vmem:[#allocation7 + $0x40] sm:$0xff] }
  0x5f   :  { %601 = vmatprep.mubr.msk.f32.mxu1 %vm840_vm0, %v841_v1  ;;  %v715_v34 = vpack.c.bf16 %v377_v33, %v376_v32  ;;  %v379_v36 = vld [vmem:[#allocation7 + $0x48] sm:$0xff]  ;;  %v380_v38 = vld [vmem:[#allocation7 + $0x50] sm:$0xff]  ;;  %v381_v39 = vld [vmem:[#allocation7 + $0x58] sm:$0xff] }
  0x60   :  { %v718_v37 = vpack.c.bf16 %v379_v36, %v378_v35  ;;  %v721_v40 = vpack.c.bf16 %v381_v39, %v380_v38  ;;  %v382_v41 = vld [vmem:[#allocation7 + $0x60] sm:$0xff]  ;;  %v383_v42 = vld [vmem:[#allocation7 + $0x68] sm:$0xff]  ;;  %v473_v48 = vld [vmem:[%s979_s2] ss:$0 sm:$0xff] }
  0x61   :  { %662 = vmatpush3.bf16.msra.mxu0 %v661_v51  ;;  %686 = vmatpush3.bf16.msra.mxu1 %v685_v63  ;;  %v724_v43 = vpack.c.bf16 %v383_v42, %v382_v41  ;;  %v384_v53 = vld [vmem:[#allocation7 + $0x70] sm:$0xff]  ;;  %v385_v54 = vld [vmem:[#allocation7 + $0x78] sm:$0xff] }
  0x62   :  { %664 = vmatprep.subr.bf16.mxu0 %v663_v55  ;;  %687 = vmatprep.subr.bf16.mxu1 %v839_v0  ;;  %v727_v55 = vpack.c.bf16 %v385_v54, %v384_v53  ;;  %v477_v60 = vld [vmem:[%s983_s6] ss:$0 sm:$0xff] }
  0x65   :  { %666 = vmatpush3.bf16.msra.mxu0 %v665_v61  ;;  %689 = vmatpush3.bf16.msra.mxu1 %v688_v7 }
  0x66   :  { %668 = vmatprep.subr.bf16.mxu0 %v667_v2  ;;  %690 = vmatprep.subr.bf16.mxu1 %v839_v0 }
  0x69   :  { %670 = vmatpush3.bf16.msra.mxu0 %v669_v6  ;;  %692 = vmatpush3.bf16.msra.mxu1 %v691_v11 }
  0x6a   :  { %705 = vmatprep.subr.bf16.mxu0 %v839_v0  ;;  %693 = vmatprep.subr.bf16.mxu1 %v839_v0 }
  0x6c   :  { %200 = vmatmul.mubr.f32.vlgmr.msra.gmra.mrb[0].mxu0 %v79_v10 }
  0x6d   :  { %636 = vmatprep.mubr.msk.f32.mxu0 %vm840_vm0, %v841_v1  ;;  %695 = vmatpush3.bf16.msra.mxu1 %v694_v14  ;;  %v703_v1 = vpack.c.bf16 %v291_v22, %v290_v21 }
  0x6e   :  { %696 = vmatprep.subr.bf16.mxu1 %v839_v0  ;;  %707 = vmatpush3.bf16.msra.mxu0 %v706_v26 }
  0x6f   :  { %708 = vmatprep.subr.bf16.mxu0 %v839_v0 }
  0x71   :  { %698 = vmatpush3.bf16.msra.mxu1 %v697_v17 }
  0x72   :  { %699 = vmatprep.subr.bf16.mxu1 %v839_v0  ;;  %710 = vmatpush3.bf16.msra.mxu0 %v709_v28 }
  0x73   :  { %711 = vmatprep.subr.bf16.mxu0 %v839_v0 }
  0x75   :  { %701 = vmatpush3.bf16.msra.mxu1 %v700_v20 }
  0x76   :  { %702 = vmatprep.subr.bf16.mxu1 %v839_v0  ;;  %713 = vmatpush3.bf16.msra.mxu0 %v712_v31 }
  0x77   :  { %714 = vmatprep.subr.bf16.mxu0 %v839_v0 }
  0x79   :  { %704 = vmatpush3.bf16.msra.mxu1 %v703_v1 }
  0x7a   :  { %716 = vmatpush3.bf16.msra.mxu0 %v715_v34 }
  0x7b   :  { %717 = vmatprep.subr.bf16.mxu0 %v839_v0 }
  0x7e   :  { %719 = vmatpush3.bf16.msra.mxu0 %v718_v37 }
  0x7f   :  { %720 = vmatprep.subr.bf16.mxu0 %v839_v0 }
  0x82   :  { %722 = vmatpush3.bf16.msra.mxu0 %v721_v40 }
  0x83   :  { %723 = vmatprep.subr.bf16.mxu0 %v839_v0 }
  0x86   :  { %725 = vmatpush3.bf16.msra.mxu0 %v724_v43 }
  0x87   :  { %726 = vmatprep.subr.bf16.mxu0 %v839_v0  ;;  %v476_v0 = vld [vmem:[%s981_s4] ss:$0 sm:$0xff] }
  0x8a   :  { %728 = vmatpush3.bf16.msra.mxu0 %v727_v55 }
 0x12f   :  { %v271_v44 = vpop.f32.mrb[0].mxu1 }
 0x130   :  { %v568_v45 = vpop.f32.mrb[1].mxu1 }
 0x13f   :  { %v510_v46 = vpop.f32.mrb[0].mxu0 }
 0x140   :  { %v511_v47 = vpop.f32.mrb[1].mxu0 }
 0x141   :  { %v512_v49 = vadd.f32 %v511_v47, %v510_v46 }
 0x143   :  { %v202_v50 = vadd.f32 %v512_v49, %v473_v48 }
 0x145   :  { %v272_v51 = vadd.f32 %v271_v44, %v202_v50 }
 0x147   :  { %v275_v52 = vmax.f32 %v272_v51, 0.0 }
 0x149   :  { %602 = vmatmul.mubr.f32.vlgmr.msra.gmra.mrb[2].mxu1 %v275_v52 }
 0x21c   :  { %v365_v56 = vpop.f32.mrb[2].mxu1 }
 0x21d   :  { %v366_v57 = vadd.f32 %v476_v0, %v365_v56  ;;  %v603_v58 = vpop.f32.mrb[3].mxu1 }
 0x21f   :  { %v369_v59 = vmax.f32 %v366_v57, 0.0 }
 0x221   :  { %637 = vmatmul.mubr.f32.vlgmr.msra.gmra.mrb[2].mxu0 %v369_v59 }
 0x2f4   :  { %v459_v61 = vpop.f32.mrb[2].mxu0 }
 0x2f5   :  { %v460_v62 = vadd.f32 %v477_v60, %v459_v61  ;;  %v638_v63 = vpop.f32.mrb[3].mxu0 }
 0x2f7   :  { %v463_v2 = vmax.f32 %v460_v62, 0.0 }
 0x2f9   :  { %465 = vst.msk [vmem:[%s984_s7] sm:$0xff] %vm464_vm5, %v463_v2 }
 0x2fa   :  { %470 = vsyncpa [#allocation3], 1 }
 0x2fb   :  { %471 = vsyncpa [#allocation5], 1 }
 0x2fc   :  { %472 = vsyncpa [#allocation8], 1 }

</bundles_post_ra>
